<compile_context>
chip_gen: v5e
topology: v5e:2x2
jax: 0.10.0
libtpu: 0.0.40
codegen_flags: <defaults>
</compile_context>

<pallas_src>
import jax
import jax.numpy as jnp
from jax.experimental import pallas as pl
from jax.experimental.pallas import tpu as pltpu


def _scale_kernel(scale_ref, x_ref, o_ref):
    # scale_ref: (1,) f32 scalar parameter in SMEM
    # x_ref / o_ref: (TM, LANE) tile in VMEM
    s = scale_ref[0]
    o_ref[...] = (x_ref[...] * s).astype(o_ref.dtype)


def scale_forward(x, scale):
    """Forward of the PyTorch `Scale` module: x * scale (learnable scalar)."""
    orig_shape = x.shape
    total = x.size
    scale1 = jnp.asarray(scale, dtype=jnp.float32).reshape(1)

    if total == 0:
        return x

    # ---- lane-dense layout with zero copies --------------------------------
    # The flat view of a contiguous tensor reshapes for free; we only need its
    # length to factor into (rows, LANE) with LANE a multiple of 128 so stores
    # are full-width unmasked vst.
    LANE = 0
    for cand in (1024, 512, 256, 128):
        if total % cand == 0:
            LANE = cand
            break
    if LANE == 0:
        # Not lane-dense: a Pallas slab would require pad + slice (two extra
        # full HBM passes).  Such shapes are tiny/irregular; the plain XLA
        # elementwise multiply is the faster, exactly-equivalent path.
        return (x.astype(jnp.float32) * scale1[0]).astype(x.dtype)

    M = total // LANE
    x2d = x.reshape(M, LANE)          # free: contiguous reshape, no data copy

    # ---- tile choice --------------------------------------------------------
    # Live VMEM ~= 4 tiles (double-buffered input + output).  TM<=1024 keeps
    # the footprint <=16 MiB for f32 @ LANE=1024; the explicit vmem limit
    # below covers v5e's 16 MiB default and stays well under v7x's 64 MiB
    # physical VMEM.  Do not raise TM past 1024 without re-checking v7x.
    if M <= 1024:
        TM = M                        # block equals full extent: (8,128) rule ok
    else:
        TM = 1024                     # multiple of 8; ragged last block handled
    grid = (pl.cdiv(M, TM),)

    tile_bytes = TM * LANE * x.dtype.itemsize
    vmem_limit = int(min(48 * 1024 * 1024, max(16 * 1024 * 1024, 6 * tile_bytes)))

    out2d = pl.pallas_call(
        _scale_kernel,
        out_shape=jax.ShapeDtypeStruct((M, LANE), x.dtype),
        grid=grid,
        in_specs=[
            pl.BlockSpec(memory_space=pltpu.SMEM),        # scalar parameter
            pl.BlockSpec((TM, LANE), lambda i: (i, 0)),   # streamed input tiles
        ],
        out_specs=pl.BlockSpec((TM, LANE), lambda i: (i, 0)),
        # No input_output_aliases: the caller keeps x (e.g. for backward), so
        # aliasing would trigger a defensive full copy before the call.
        compiler_params=pltpu.CompilerParams(
            dimension_semantics=("parallel",),   # shard grid across TCs (v7x)
            vmem_limit_bytes=vmem_limit,
        ),
        cost_estimate=pl.CostEstimate(
            flops=total,
            transcendentals=0,
            bytes_accessed=2 * total * x.dtype.itemsize,
        ),
    )(scale1, x2d)

    return out2d.reshape(orig_shape)


if __name__ == "__main__":
    key = jax.random.PRNGKey(0)
    k1, k2, k3 = jax.random.split(key, 3)

    # Module-spec shapes: NCHW activation, scale init = 1.0
    x = jax.random.normal(k1, (2, 4, 16, 16), dtype=jnp.float32)   # 2048 elems
    scale = jnp.array([1.0], dtype=jnp.float32)   # nn.Parameter([1.0])
    out = jax.block_until_ready(scale_forward(x, scale))
    assert out.shape == x.shape and out.dtype == x.dtype
    assert jnp.allclose(out, x * scale[0], atol=1e-6, rtol=1e-6)

    # Non-trivial scale; size is a multiple of 128 but not 1024 (LANE=128 path)
    x2 = jax.random.normal(k2, (2, 3, 8, 8), dtype=jnp.float32)    # 384 elems
    scale2 = jnp.array([0.5], dtype=jnp.float32)
    out2 = jax.block_until_ready(scale_forward(x2, scale2))
    assert out2.shape == x2.shape and out2.dtype == x2.dtype
    assert jnp.allclose(out2, x2 * scale2[0], atol=1e-6, rtol=1e-6)

    # Size not a multiple of 128: exact XLA fallback (no pad/slice copies)
    x3 = jax.random.normal(k3, (2, 3, 7, 7), dtype=jnp.float32)    # 294 elems
    out3 = jax.block_until_ready(scale_forward(x3, scale2))
    assert out3.shape == x3.shape and out3.dtype == x3.dtype
    assert jnp.allclose(out3, x3 * scale2[0], atol=1e-6, rtol=1e-6)

    # bf16 activation: f32 multiply, product cast back to bf16 inside kernel
    x4 = jax.random.normal(k1, (4, 8, 32, 16), dtype=jnp.bfloat16)  # 16384 elems
    out4 = jax.block_until_ready(scale_forward(x4, scale2))
    assert out4.shape == x4.shape and out4.dtype == jnp.bfloat16
    assert jnp.allclose(out4.astype(jnp.float32),
                        x4.astype(jnp.float32) * 0.5, atol=1e-2, rtol=1e-2)

    print("KERNEL_OK")
</pallas_src>

<mosaic_0001>
module attributes {stable_mosaic.version = 11 : i64} {
  func.func @_scale_kernel(%arg0: i32, %arg1: memref<1xf32, #tpu.memory_space<smem>>, %arg2: memref<2x1024xf32, #tpu.memory_space<vmem>>, %arg3: memref<2x1024xf32, #tpu.memory_space<vmem>>) attributes {dimension_semantics = [#tpu.dimension_semantics<parallel>], iteration_bounds = array<i64: 1>, scalar_prefetch = 0 : i64, scratch_operands = 0 : i64, tpu.core_type = #tpu.core_type<tc>, window_params = [{transform_indices = @transform_0, window_bounds = array<i64: 1>}, {transform_indices = @transform_1, window_bounds = array<i64: 2, 1024>}, {transform_indices = @transform_2, window_bounds = array<i64: 2, 1024>}]} {
    %c0 = arith.constant 0 : index
    %0 = memref.load %arg1[%c0] : memref<1xf32, #tpu.memory_space<smem>>
    %c0_0 = arith.constant 0 : index
    %c0_1 = arith.constant 0 : index
    %1 = vector.load %arg2[%c0_0, %c0_1] : memref<2x1024xf32, #tpu.memory_space<vmem>>, vector<2x1024xf32>
    %2 = vector.broadcast %0 : f32 to vector<2x1024xf32>
    %3 = arith.mulf %1, %2 : vector<2x1024xf32>
    %c0_2 = arith.constant 0 : index
    %c0_3 = arith.constant 0 : index
    %4 = vector.load %arg3[%c0_2, %c0_3] : memref<2x1024xf32, #tpu.memory_space<vmem>>, vector<2x1024xf32>
    tpu.vector_store %arg3[%c0_2, %c0_3], %3 {strides = array<i32>} : memref<2x1024xf32, #tpu.memory_space<vmem>>, vector<2x1024xf32>,
    return
  }
  func.func @transform_0(%arg0: i32) -> i32 {
    %c0_i32 = arith.constant 0 : i32
    %c0_i32_0 = arith.constant 0 : i32
    return %c0_i32 : i32
  }
  func.func @transform_1(%arg0: i32) -> (i32, i32) {
    %c0_i32 = arith.constant 0 : i32
    %c0_i32_0 = arith.constant 0 : i32
    return %arg0, %c0_i32 : i32, i32
  }
  func.func @transform_2(%arg0: i32) -> (i32, i32) {
    %c0_i32 = arith.constant 0 : i32
    %c0_i32_0 = arith.constant 0 : i32
    return %arg0, %c0_i32 : i32, i32
  }
}

</mosaic_0001>

<bundles_post_ra>
// kernel: tpu_custom_call.1
= control target key start
LH: loop header
LB: loop body
LE: loop exit
PB: predicated region body
PF: predicated region fallthrough
CT: control target
= control target key end

     0   :  { %8 = vsyncpa [#allocation4], 0  ;;  %s132_s0 = inlined_call_operand.<no memory space> [shape: f32[1], index: 0, kind: input, shape index: {}]   ;;  %s133_s1 = inlined_call_operand.hbm [shape: f32[2,1024], index: 1, kind: input, shape index: {}]   ;;  %s134_s2 = inlined_call_operand.hbm [shape: f32[2,1024], index: 2, kind: output, shape index: {}]  }
   0x1   :  { %9 = vsyncpa [#allocation5], 0  ;;  %s17_s11 = sshll.u32 %s133_s1, 4  ;;  %s106_s12 = smov [#allocation3]   ;;  %s18_s11 = int_to_ptr.hbm [resolvable:$true] %s17_s11 }
   0x2   :  { %s19_s13 = sshll.u32 %s106_s12, 4  ;;  %s20_s13 = int_to_ptr.vmem [resolvable:$true] %s19_s13 }
   0x3   :  { %22 = dma.hbm_to_vmem [thread:$0]  %s18_s11, 256, %s20_s13, [#allocation4]  }
   0x4   :  { %102 = dma.done.wait [#allocation4], 256  }
   0x5   :  { %103 = vsyncadd [#allocation4], 4294967040  ;;  %v30_v0 = vstv %s132_s0  ;;  %s107_s16 = smov [#allocation6]   ;;  %s42_s20 = sshll.u32 %s134_s2, 4  ;;  %v28_v1 = vld [vmem:[#allocation3] sm:$0xff]  ;;  %v29_v2 = vld [vmem:[#allocation3 + $0x8] sm:$0xff]  ;;  %s43_s20 = int_to_ptr.hbm [resolvable:$true] %s42_s20 }
   0x6   :  { %s40_s17 = sshll.u32 %s107_s16, 4  ;;  %v31_v3 = vmul.f32 %v30_v0, %v28_v1  ;;  %v32_v4 = vmul.f32 %v30_v0, %v29_v2  ;;  %s41_s17 = int_to_ptr.vmem [resolvable:$true] %s40_s17 }
   0x8   :  { %33 = vst [vmem:[#allocation6] sm:$0xff] %v31_v3 }
   0x9   :  { %34 = vst [vmem:[#allocation6 + $0x8] sm:$0xff] %v32_v4 }
   0xa   :  { %45 = dma.vmem_to_hbm [thread:$0]  %s41_s17, 256, %s43_s20, [#allocation5]  }
   0xb   :  { %104 = dma.done.wait [#allocation5], 256  }
   0xc   :  { %105 = vsyncadd [#allocation5], 4294967040 }
   0xd   :  { %50 = vsyncpa [#allocation4], 1 }
   0xe   :  { %51 = vsyncpa [#allocation5], 1 }

</bundles_post_ra>
